<compile_context>
chip_gen: v6e
topology: v6e:2x2x1
jax: 0.10.0
libtpu: 0.0.40
codegen_flags: <defaults>
</compile_context>

<pallas_src>
import jax
import jax.numpy as jnp
import numpy as np
from jax.experimental import pallas as pl
from jax.experimental.pallas import tpu as pltpu

_LANE = 128


def _vmem_budget_bytes():
    """Generation-aware scoped-VMEM request, with a safe fallback."""
    try:
        cap = int(pltpu.get_tpu_info().vmem_capacity_bytes)
    except Exception:
        cap = None
    if cap is None:
        return 32 << 20            # unknown generation: conservative, safe everywhere
    if cap >= (128 << 20):         # v5e / v6e: 128 MiB physical
        return 96 << 20
    if cap >= (64 << 20):          # v7x: 64 MiB physical per TC
        return 48 << 20
    return max(8 << 20, (cap * 3) // 4)


def _choose_hw_tile(hw, c, itemsize, vmem_budget, target_tile_bytes=4 << 20):
    """Byte-budgeted, lane-dense HW tile; returns (THW, padded HW)."""
    hw128 = ((hw + _LANE - 1) // _LANE) * _LANE
    # Kernel 2 keeps ~4 (C, THW) tiles live (2x input + 2x output); 30% headroom.
    cap = max(_LANE, int(vmem_budget * 0.7) // (4 * c * itemsize))
    tgt = max(_LANE, target_tile_bytes // (c * itemsize))
    t = min(cap, tgt, hw128)
    t = max(_LANE, (t // _LANE) * _LANE)
    # Prefer an exact divisor of the 128-padded HW (no extra zero padding) as
    # long as it doesn't shrink the tile by more than 2x.
    best = None
    for cand in range(t, _LANE - 1, -_LANE):
        if hw128 % cand == 0:
            best = cand
            break
    if best is not None and best * 2 >= t:
        return best, hw128
    hw_pad = ((hw128 + t - 1) // t) * t
    return t, hw_pad


# ---------------------------------------------------------------------------
# Kernel 1: per-image partial stats.  For each n, accumulate over HW tiles:
#   stats[n, :, 0]            = sum_m x
#   stats[n, :, 128 : 128+C]  = sum_m x x^T        (lane-aligned slab)
# Batch axis "parallel" (megacore shard on v7x); HW-tile axis "arbitrary".
# ---------------------------------------------------------------------------
def _stats_kernel(x_ref, stats_ref, sum_acc, xxt_acc):
    t = pl.program_id(1)

    @pl.when(t == 0)
    def _():
        sum_acc[...] = jnp.zeros_like(sum_acc)
        xxt_acc[...] = jnp.zeros_like(xxt_acc)

    x = x_ref[0]                                              # (C, THW), native dtype
    sum_acc[...] += jnp.sum(x.astype(jnp.float32), axis=-1, keepdims=True)
    xxt_acc[...] += jax.lax.dot_general(                      # (C, C), f32 accumulate
        x, x, (((1,), (1,)), ((), ())),
        preferred_element_type=jnp.float32)

    @pl.when(t == pl.num_programs(1) - 1)
    def _():
        c = xxt_acc.shape[0]
        stats_ref[0, :, 0:1] = sum_acc[...]
        stats_ref[0, :, _LANE:_LANE + c] = xxt_acc[...]


# ---------------------------------------------------------------------------
# Kernel 2: out = A @ x + c  with A = (weight ⊙_row blockdiag(wm)) and
#           c = bias - weight ⊙ (blockdiag(wm) @ mean).
# ---------------------------------------------------------------------------
def _whiten_kernel(a_ref, c_ref, x_ref, o_ref):
    x = x_ref[0].astype(jnp.float32)                          # (C, THW)
    xn = jnp.dot(a_ref[...], x, preferred_element_type=jnp.float32) + c_ref[...]
    o_ref[0] = xn.astype(o_ref.dtype)


def qr_whitening_forward(X, weight, bias, *, num_channels, eps=1e-3, hw_tile=None):
    """Training-mode forward of QRWhitening (group whitening + affine)."""
    N, C, H, W = X.shape
    G = (C - 1) // num_channels + 1
    Cg = num_channels
    # TODO(synk): the PyTorch module supports a ragged last group
    # (C % num_channels != 0); the packed block-diagonal kernel needs uniform groups.
    assert C == G * Cg, "num_features must be divisible by num_channels here"

    HW = H * W
    M = N * HW
    itemsize = jnp.dtype(X.dtype).itemsize
    vmem_limit = _vmem_budget_bytes()
    if hw_tile is None:
        THW, HW_pad = _choose_hw_tile(HW, C, itemsize, vmem_limit)
    else:
        THW = hw_tile
        HW_pad = ((HW + THW - 1) // THW) * THW
    n_hw_tiles = HW_pad // THW

    # Keep x in its native dtype (no f32 up-cast pass through HBM); reshape is free.
    # Zero-pad HW to a lane-dense multiple of the tile when needed (zeros do not
    # perturb sum / x x^T; padded output columns are sliced off at the end).
    x3 = X.reshape(N, C, HW)
    if HW_pad != HW:
        x3 = jnp.pad(x3, ((0, 0), (0, 0), (0, HW_pad - HW)))

    w_vec = weight.reshape(C).astype(jnp.float32)
    b_vec = bias.reshape(C).astype(jnp.float32)

    stats_width = _LANE + ((C + _LANE - 1) // _LANE) * _LANE

    # --- Pallas kernel 1: per-image partial sum(x) and x @ x^T --------------
    stats = pl.pallas_call(
        _stats_kernel,
        out_shape=jax.ShapeDtypeStruct((N, C, stats_width), jnp.float32),
        grid_spec=pltpu.PrefetchScalarGridSpec(
            num_scalar_prefetch=0,
            grid=(N, n_hw_tiles),
            in_specs=[pl.BlockSpec((1, C, THW), lambda n, t: (n, 0, t))],
            out_specs=pl.BlockSpec((1, C, stats_width), lambda n, t: (n, 0, 0)),
            scratch_shapes=[
                pltpu.VMEM((C, 1), jnp.float32),   # running sum(x)
                pltpu.VMEM((C, C), jnp.float32),   # running x @ x^T
            ],
        ),
        compiler_params=pltpu.CompilerParams(
            dimension_semantics=("parallel", "arbitrary"),
            vmem_limit_bytes=vmem_limit,
        ),
    )(x3)

    # Combine the per-image partial slabs in JAX (tiny).
    sums = jnp.sum(stats[:, :, 0], axis=0)                     # (C,)
    xxt = jnp.sum(stats[:, :, _LANE:_LANE + C], axis=0)        # (C, C)
    mean = (sums / M).reshape(C, 1)

    # One-pass per-group covariance: sigma_g = E[xx^T]_g - mean_g mean_g^T + eps*I.
    # TODO(synk): for |mean| >> std this cancels in f32 (the reference uses the
    # centered two-pass form); a per-channel pivot shift in kernel 1 would fix it.
    xxt_g = xxt.reshape(G, Cg, G, Cg)
    cov_blocks = jnp.stack([xxt_g[g, :, g, :] for g in range(G)], axis=0) / M
    mean_g = mean.reshape(G, Cg, 1)
    sigma = (cov_blocks
             - mean_g @ jnp.swapaxes(mean_g, -1, -2)
             + eps * jnp.eye(Cg, dtype=jnp.float32))

    # TODO(synk): tiny Cg x Cg Cholesky / triangular solve has no Pallas TPU
    # equivalent; done in plain JAX between the two kernels.
    L = jnp.linalg.cholesky(sigma)                              # (G, Cg, Cg)
    eye_cg = jnp.eye(Cg, dtype=jnp.float32)
    wm = jax.vmap(
        lambda l: jax.scipy.linalg.solve_triangular(l, eye_cg, lower=True))(L)

    # TODO(synk): running_mean / running_projection EMA updates (momentum) and
    # the eval-mode path are not emitted; `mean` and `wm` are available here.

    # Fold groups + mean + affine into one (C, C) matrix and a (C, 1) offset:
    #   out = (w ⊙_row blockdiag(wm)) @ x + (b - w ⊙ (blockdiag(wm) @ mean)).
    wm_full = jax.scipy.linalg.block_diag(*[wm[g] for g in range(G)])   # (C, C)
    a_eff = w_vec[:, None] * wm_full
    c_eff = b_vec[:, None] - w_vec[:, None] * (wm_full @ mean)          # (C, 1)

    # --- Pallas kernel 2: out = A @ x + c, tiled over (N, HW) ---------------
    # TODO(synk): on v7x, sweep pipeline_mode=pl.Buffered(3) on the x input and
    # add a fused single-pass path (x resident in VMEM, in-kernel Cholesky) for
    # activations that fit in ~half of VMEM; kept two-pass here for robustness.
    out3 = pl.pallas_call(
        _whiten_kernel,
        out_shape=jax.ShapeDtypeStruct((N, C, HW_pad), X.dtype),
        grid_spec=pltpu.PrefetchScalarGridSpec(
            num_scalar_prefetch=0,
            grid=(N, n_hw_tiles),
            in_specs=[
                pl.BlockSpec((C, C), lambda n, t: (0, 0)),
                pl.BlockSpec((C, 1), lambda n, t: (0, 0)),
                pl.BlockSpec((1, C, THW), lambda n, t: (n, 0, t)),
            ],
            out_specs=pl.BlockSpec((1, C, THW), lambda n, t: (n, 0, t)),
        ),
        compiler_params=pltpu.CompilerParams(
            dimension_semantics=("parallel", "parallel"),
            vmem_limit_bytes=vmem_limit,
        ),
    )(a_eff, c_eff, x3)

    if HW_pad != HW:
        out3 = out3[:, :, :HW]
    return out3.reshape(N, C, H, W)


def _reference_forward(X, weight, bias, *, num_channels, eps=1e-3):
    """Pure-JAX replica of the PyTorch training-mode forward (for checking)."""
    N, C, H, W = X.shape
    G = C // num_channels
    outs = []
    for g in range(G):
        Xg = X[:, g * num_channels:(g + 1) * num_channels]
        x = jnp.transpose(Xg, (1, 0, 2, 3)).reshape(num_channels, -1)
        m = x.shape[-1]
        mean = jnp.mean(x, axis=-1, keepdims=True)
        xc = x - mean
        sigma = eps * jnp.eye(num_channels, dtype=X.dtype) + (xc @ xc.T) / m
        L = jnp.linalg.cholesky(sigma)
        wm = jnp.linalg.inv(L)
        xn = wm @ xc
        outs.append(jnp.transpose(xn.reshape(num_channels, N, H, W), (1, 0, 2, 3)))
    X_hat = jnp.concatenate(outs, axis=1)
    return X_hat * weight + bias


if __name__ == "__main__":
    # Module config: num_features=8, num_channels=4 -> 2 groups of 4 channels.
    num_features = 8
    num_channels = 4
    eps = 0.001

    key = jax.random.PRNGKey(0)
    X = jax.random.normal(key, (2, num_features, 16, 16), dtype=jnp.float32)

    # Parameters as in reset_parameters(): weight=1, bias=0, shape [1, C, 1, 1].
    weight = jnp.ones((1, num_features, 1, 1), dtype=jnp.float32)
    bias = jnp.zeros((1, num_features, 1, 1), dtype=jnp.float32)

    out = qr_whitening_forward(X, weight, bias, num_channels=num_channels, eps=eps)
    out = jax.block_until_ready(out)

    ref = _reference_forward(X, weight, bias, num_channels=num_channels, eps=eps)
    np.testing.assert_allclose(np.asarray(out), np.asarray(ref), rtol=1e-2, atol=1e-2)

    # bf16 smoke run: exercises the native-dtype (no f32 up-cast) path.
    out_bf16 = qr_whitening_forward(X.astype(jnp.bfloat16), weight, bias,
                                    num_channels=num_channels, eps=eps)
    out_bf16 = jax.block_until_ready(out_bf16)
    assert bool(jnp.all(jnp.isfinite(out_bf16.astype(jnp.float32))))

    print("KERNEL_OK")
</pallas_src>

<mosaic_0001>
module attributes {stable_mosaic.version = 11 : i64} {
  func.func @_stats_kernel(%arg0: i32, %arg1: i32, %arg2: memref<1x8x256xf32, #tpu.memory_space<vmem>>, %arg3: memref<1x8x256xf32, #tpu.memory_space<vmem>>, %arg4: memref<8x1xf32, #tpu.memory_space<vmem>>, %arg5: memref<8x8xf32, #tpu.memory_space<vmem>>) attributes {dimension_semantics = [#tpu.dimension_semantics<parallel>, #tpu.dimension_semantics<arbitrary>], iteration_bounds = array<i64: 2, 1>, scalar_prefetch = 0 : i64, scratch_operands = 2 : i64, tpu.core_type = #tpu.core_type<tc>, window_params = [{transform_indices = @transform_0, window_bounds = array<i64: 1, 8, 256>}, {transform_indices = @transform_1, window_bounds = array<i64: 1, 8, 256>}]} {
    %c0_i32 = arith.constant 0 : i32
    %0 = arith.cmpi eq, %arg1, %c0_i32 : i32
    %1 = arith.extui %0 : i1 to i32
    %c0_i32_0 = arith.constant 0 : i32
    %2 = arith.cmpi ne, %1, %c0_i32_0 : i32
    scf.if %2 {
      %cst_14 = arith.constant 0.000000e+00 : f32
      %17 = vector.broadcast %cst_14 : f32 to vector<8x1xf32>
      %c0_15 = arith.constant 0 : index
      %c0_16 = arith.constant 0 : index
      %18 = vector.load %arg4[%c0_15, %c0_16] : memref<8x1xf32, #tpu.memory_space<vmem>>, vector<8x1xf32>
      tpu.vector_store %arg4[%c0_15, %c0_16], %17 {strides = array<i32>} : memref<8x1xf32, #tpu.memory_space<vmem>>, vector<8x1xf32>,
      %cst_17 = arith.constant 0.000000e+00 : f32
      %19 = vector.broadcast %cst_17 : f32 to vector<8x8xf32>
      %c0_18 = arith.constant 0 : index
      %c0_19 = arith.constant 0 : index
      %20 = vector.load %arg5[%c0_18, %c0_19] : memref<8x8xf32, #tpu.memory_space<vmem>>, vector<8x8xf32>
      tpu.vector_store %arg5[%c0_18, %c0_19], %19 {strides = array<i32>} : memref<8x8xf32, #tpu.memory_space<vmem>>, vector<8x8xf32>,
    } else {
    }
    %c0 = arith.constant 0 : index
    %c0_1 = arith.constant 0 : index
    %c0_2 = arith.constant 0 : index
    %3 = vector.load %arg2[%c0, %c0_1, %c0_2] : memref<1x8x256xf32, #tpu.memory_space<vmem>>, vector<1x8x256xf32>
    %4 = vector.shape_cast %3 : vector<1x8x256xf32> to vector<8x256xf32>
    %c0_3 = arith.constant 0 : index
    %c0_4 = arith.constant 0 : index
    %5 = vector.load %arg4[%c0_3, %c0_4] : memref<8x1xf32, #tpu.memory_space<vmem>>, vector<8x1xf32>
    %cst = arith.constant dense<0.000000e+00> : vector<8xf32>
    %6 = vector.multi_reduction <add>, %4, %cst [1] : vector<8x256xf32> to vector<8xf32>
    %7 = vector.shape_cast %6 : vector<8xf32> to vector<8x1xf32>
    %8 = arith.addf %5, %7 : vector<8x1xf32>
    %c0_5 = arith.constant 0 : index
    %c0_6 = arith.constant 0 : index
    %9 = vector.load %arg4[%c0_5, %c0_6] : memref<8x1xf32, #tpu.memory_space<vmem>>, vector<8x1xf32>
    tpu.vector_store %arg4[%c0_5, %c0_6], %8 {strides = array<i32>} : memref<8x1xf32, #tpu.memory_space<vmem>>, vector<8x1xf32>,
    %c0_7 = arith.constant 0 : index
    %c0_8 = arith.constant 0 : index
    %10 = vector.load %arg5[%c0_7, %c0_8] : memref<8x8xf32, #tpu.memory_space<vmem>>, vector<8x8xf32>
    %cst_9 = arith.constant dense<0.000000e+00> : vector<8x8xf32>
    %11 = tpu.matmul %4, %4, %cst_9 {dimension_numbers = #tpu.dot_dimension_numbers<[1], [1], [0], [0], [0, 0, 1, 0], [], []>} : vector<8x256xf32>, vector<8x256xf32>, vector<8x8xf32> -> vector<8x8xf32>
    %12 = arith.addf %10, %11 : vector<8x8xf32>
    %c0_10 = arith.constant 0 : index
    %c0_11 = arith.constant 0 : index
    %13 = vector.load %arg5[%c0_10, %c0_11] : memref<8x8xf32, #tpu.memory_space<vmem>>, vector<8x8xf32>
    tpu.vector_store %arg5[%c0_10, %c0_11], %12 {strides = array<i32>} : memref<8x8xf32, #tpu.memory_space<vmem>>, vector<8x8xf32>,
    %c0_i32_12 = arith.constant 0 : i32
    %14 = arith.cmpi eq, %arg1, %c0_i32_12 : i32
    %15 = arith.extui %14 : i1 to i32
    %c0_i32_13 = arith.constant 0 : i32
    %16 = arith.cmpi ne, %15, %c0_i32_13 : i32
    scf.if %16 {
      %c0_14 = arith.constant 0 : index
      %c0_15 = arith.constant 0 : index
      %17 = vector.load %arg4[%c0_14, %c0_15] : memref<8x1xf32, #tpu.memory_space<vmem>>, vector<8x1xf32>
      %c0_16 = arith.constant 0 : index
      %c0_17 = arith.constant 0 : index
      %c0_18 = arith.constant 0 : index
      %18 = vector.load %arg3[%c0_16, %c0_17, %c0_18] : memref<1x8x256xf32, #tpu.memory_space<vmem>>, vector<1x8x1xf32>
      %19 = vector.shape_cast %18 : vector<1x8x1xf32> to vector<8x1xf32>
      %20 = vector.shape_cast %17 : vector<8x1xf32> to vector<1x8x1xf32>
      tpu.vector_store %arg3[%c0_16, %c0_17, %c0_18], %20 {strides = array<i32>} : memref<1x8x256xf32, #tpu.memory_space<vmem>>, vector<1x8x1xf32>,
      %c0_19 = arith.constant 0 : index
      %c0_20 = arith.constant 0 : index
      %21 = vector.load %arg5[%c0_19, %c0_20] : memref<8x8xf32, #tpu.memory_space<vmem>>, vector<8x8xf32>
      %c0_21 = arith.constant 0 : index
      %c0_22 = arith.constant 0 : index
      %c128 = arith.constant 128 : index
      %22 = vector.load %arg3[%c0_21, %c0_22, %c128] : memref<1x8x256xf32, #tpu.memory_space<vmem>>, vector<1x8x8xf32>
      %23 = vector.shape_cast %22 : vector<1x8x8xf32> to vector<8x8xf32>
      %24 = vector.shape_cast %21 : vector<8x8xf32> to vector<1x8x8xf32>
      tpu.vector_store %arg3[%c0_21, %c0_22, %c128], %24 {strides = array<i32>} : memref<1x8x256xf32, #tpu.memory_space<vmem>>, vector<1x8x8xf32>,
    } else {
    }
    return
  }
  func.func @transform_0(%arg0: i32, %arg1: i32) -> (i32, i32, i32) {
    %c0_i32 = arith.constant 0 : i32
    %c0_i32_0 = arith.constant 0 : i32
    return %arg0, %c0_i32, %arg1 : i32, i32, i32
  }
  func.func @transform_1(%arg0: i32, %arg1: i32) -> (i32, i32, i32) {
    %c0_i32 = arith.constant 0 : i32
    %c0_i32_0 = arith.constant 0 : i32
    %c0_i32_1 = arith.constant 0 : i32
    return %arg0, %c0_i32, %c0_i32_0 : i32, i32, i32
  }
}

</mosaic_0001>

<bundles_post_ra>
// kernel: tpu_custom_call.1
= control target key start
LH: loop header
LB: loop body
LE: loop exit
PB: predicated region body
PF: predicated region fallthrough
CT: control target
= control target key end

     0   :  { %6 = vsyncpa [#allocation5], 0  ;;  %s693_s0 = inlined_call_operand.hbm [shape: f32[2,8,256], index: 0, kind: input, shape index: {}]   ;;  %s694_s1 = inlined_call_operand.hbm [shape: f32[2,8,256], index: 1, kind: output, shape index: {}]  }
   0x1   :  { %8 = vsyncpa [#allocation5 + $0x1], 0 }
   0x2   :  { %9 = vsyncpa [#allocation6], 0 }
   0x3   :  { %11 = vsyncpa [#allocation6 + $0x1], 0  ;;  %s547_s6 = smov 0   ;;  %s549_s7 = smov 0  }
   0x4   :  { %s551_s8 = smov 0   ;;  %s553_s9 = smov 0  }
   0x5   :  { %s555_s10 = smov 0   ;;  %s557_s11 = smov 0  }
   0x6 LB: > { %s344_s12 = sadd.s32 4294967295, %s532_s11   ;;  %s345_s13 = sadd.s32 4294967294, %s532_s11   ;;  %s532_s11 = sphi %s557_s11, %s17_s11   ;;  %s528_s10 = sphi %s555_s10, %s706_s10   ;;  %s524_s9 = sphi %s553_s9, %s705_s9   ;;  %s520_s8 = sphi %s551_s8, %s704_s8   ;;  %s516_s7 = sphi %s549_s7, %s703_s7   ;;  %s512_s6 = sphi %s547_s6, %s702_s6  }
   0x7   : > { %s29_s14 = sadd.s32 1, %s528_s10  ;;  %s38_s15 = sadd.s32 1, %s520_s8 }
   0x8   : > { %p31_p0 = scmp.ge.s32.totalorder %s29_s14, 2  ;;  %p45_p1 = scmp.ne.s32.totalorder %s520_s8, %s516_s7 }
   0x9   : > { %p46_p2 = scmp.eq.s32.totalorder %s532_s11, 0  ;;  %p51_p3 = scmp.ne.s32.totalorder %s516_s7, %s512_s6 }
   0xa   : > { %s708_s14 = smov (%p31_p0, %s29_s14), 0  ;;  %p52_p5 = scmp.eq.s32.totalorder %s344_s12, 0 }
   0xb   : > { %p588_p4 = por %p46_p2, %p45_p1  ;;  %s33_s17 = ssub.s32 %s528_s10, %s708_s14 }
   0xc   : > { %p75_p6 = scmp.eq.s32.totalorder %s344_s12, 1  ;;  %p36_p7 = scmp.eq.s32.totalorder %s33_s17, 0 }
   0xd   : > { %p594_p8 = por %p52_p5, %p51_p3  ;;  %p81_p10 = scmp.eq.s32.totalorder %s345_s13, 1 }
   0xe   : > { %p598_p9 = por %p75_p6, %p45_p1  ;;  %p373_p13 = scmp.lt.s32.totalorder %s532_s11, 2 }
   0xf   : > { %s603_s20 = scalar_select %p36_p7, %s520_s8, %s38_s15  }
  0x10   : > { %p605_p11 = por %p81_p10, %p51_p3  ;;  %s101_s22 = sand.u32 1, %s520_s8  }
  0x11   : > { %s348_s23 = sshll.u32 %s101_s22, 4  ;;  %s359_s24 = sshll.u32 %s528_s10, 8 }
  0x12   : > { %s698_s21 = scalar_select %p605_p11, 1, 0 }
  0x13   : > { %s113_s27 = scalar_lea.hbm %s693_s0, %s359_s24  ;;  %s105_s28 = scalar_lea.vmem [#allocation4], %s348_s23 }
  0x14   : > { %s115_s29 = sshll.u32 %s105_s28, 4  ;;  %p618_p0 = pnand %p373_p13, %p588_p4  ;;  %s116_s29 = int_to_ptr.vmem [resolvable:$true] %s115_s29 }
  0x15   : > { %p351_p1 = scmp.ge.s32.totalorder %s532_s11, 1  ;;  %p120_p2 = scmp.lt.s32.totalorder %s532_s11, 3 }
  0x16   : > { %s102_s2 = scalar_lea.sflag [#allocation5], %s101_s22  ;;  %p426_p3 = pneg %p618_p0 }
  0x17   : > { %s437_s3 = scalar_lea.vmem %s116_s29, 256  ;;  %s534_s4 = smov [#allocation4]  }
  0x18   : > { %p438_p5 = scmp.ne.s32.totalorder %s116_s29, %s437_s3  ;;  %s442_s5 = sshll.u32 %s534_s4, 4  ;;  %s443_s5 = int_to_ptr.vmem [resolvable:$false] %s442_s5 }
  0x19   : > { %s444_s12 = scalar_lea.vmem %s443_s5, 512  ;;  %p445_p10 = scmp.lt.s32.totalorder %s116_s29, %s443_s5 }
  0x1a   : > { %p440_p6 = pnand %p438_p5, %p426_p3  ;;  %p446_p12 = scmp.lt.s32.totalorder %s444_s12, %s437_s3 }
  0x1c   : > { %p441_p7 = pneg %p440_p6  ;;  %p447_p4 = por %p446_p12, %p445_p10 }
  0x1e   : > { %p448_p13 = pnand %p447_p4, %p441_p7 }
  0x20   : > { %451 = shalt.err (!%p448_p13)
}
  0x21   : > { %368 = dma.hbm_to_vmem [thread:$0]  (!%p618_p0), %s113_s27, 256, %s116_s29, %s102_s2  }
  0x22   : > { %p121_p11 = pnand %p351_p1, %p120_p2 }
  0x23   : > { %s633_s13 = sand.u32 (!%p121_p11), 1, %s516_s7  }
  0x24   : > { %124 = sbr.rel (%p121_p11) target bundleno = 263 (0x107), region = 24  ;;  %s352_s15 = sshll.u32 (!%p121_p11), %s633_s13, 4 }
  0x25   : > { %s127_s16 = scalar_lea.sflag (!%p121_p11), [#allocation5], %s633_s13  ;;  %s130_s17 = scalar_lea.vmem (!%p121_p11), [#allocation4], %s352_s15 }
  0x29   : > { %503 = dma.done.wait (%p594_p8), %s127_s16, 256  }
  0x2a   : > { %505 = vsyncadd (%p594_p8), %s127_s16, 4294967040  ;;  %vm154_vm0 = vcmask 7168   ;;  %v535_v0 = vmov 0.0   ;;  %v159_v1 = vld [vmem:[%s130_s17 + $0x8] sm:$0xff]  ;;  %v158_v2 = vld [vmem:[%s130_s17] sm:$0xff]  ;;  %vm156_vm1 = vcmask 64512  }
  0x2b   : > { %155 = vst.msk [vmem:[#allocation2] sm:$0xff] %vm154_vm0, %v535_v0  ;;  %198 = vmatprep.subr.mxu0 %v159_v1  ;;  %232 = vmatprep.mubr.f32.mxu0 %v159_v1  ;;  %v161_v3 = vadd.f32 %v159_v1, %v158_v2  ;;  %s148_s18 = scalar_lea.vmem [#allocation7], %s352_s15  ;;  %s360_s22 = sshll.u32 %s524_s9, 8 }
  0x2c   : > { %199 = vmatpush1.xpose.msra.mxu0 %v158_v2  ;;  %157 = vst.msk [vmem:[#allocation3] sm:$0xff] %vm156_vm1, %v535_v0  ;;  %s263_s23 = sshll.u32 %s148_s18, 4  ;;  %s650_s26 = scalar_lea.hbm %s694_s1, %s360_s22  ;;  %s264_s23 = int_to_ptr.vmem [resolvable:$true] %s263_s23 }
  0x2d   : > { %162 = vadd.xlane.f32.xlu0 %v161_v3  ;;  %s249_s27 = scalar_lea.sflag [#allocation6], %s633_s13  ;;  %s452_s28 = scalar_lea.vmem %s264_s23, 256 }
  0x2e   : > { %p453_p8 = scmp.ne.s32.totalorder %s264_s23, %s452_s28  ;;  %s536_s29 = smov [#allocation7]  }
  0x2f   : > { %233 = vmatmul.mubr.f32.vlgmr.msra.gmra.mxu0 %v158_v2  ;;  %s456_s30 = sshll.u32 %s536_s29, 4  ;;  %s457_s30 = int_to_ptr.vmem [resolvable:$false] %s456_s30 }
  0x30   : > { %p454_p11 = pnand %p453_p8, %p598_p9  ;;  %s458_s9 = scalar_lea.vmem %s457_s30, 512 }
  0x31   : > { %p459_p0 = scmp.lt.s32.totalorder %s264_s23, %s457_s30  ;;  %p460_p1 = scmp.lt.s32.totalorder %s458_s9, %s452_s28 }
  0x32   : > { %v160_v4 = vld [vmem:[#allocation2] sm:$0xff]  ;;  %p455_p12 = pneg %p454_p11 }
  0x33   : > { %v167_v8 = vld [vmem:[#allocation3] sm:$0xff]  ;;  %p461_p2 = por %p460_p1, %p459_p0 }
  0x35   : > { %p462_p3 = pnand %p461_p2, %p455_p12 }
  0xb6   : > { %v163_v5 = vpop.xlane.xlu0 %162 }
  0xb7   : > { %v164_v6 = vadd.f32 %v163_v5, %v160_v4 }
  0xb9   : > { %166 = vst.msk [vmem:[#allocation2] sm:$0xff] %vm154_vm0, %v164_v6 }
  0xc0   : > { %v244_v7 = vld [vmem:[#allocation2] sm:$0xff] }
  0xc1   : > { %245 = vst.msk [vmem:[%s148_s18] sm:$0xff] %vm154_vm0, %v244_v7 }
  0xef   : > { %v234_v9 = vpop.f32.mrf.mxu0 }
  0xf0   : > { %v238_v10 = vadd.f32 %v234_v9, %v167_v8 }
  0xf1   : > { %v236_v11 = vpop.f32.mrf.mxu0 }
  0xf2   : > { %240 = vst.msk [vmem:[#allocation3] sm:$0xff] %vm156_vm1, %v238_v10 }
  0xf9   : > { %v246_v12 = vld [vmem:[#allocation3] sm:$0xff] }
  0xfa   : > { %247 = vst.msk [vmem:[%s148_s18 + $0x8] sm:$0xff] %vm156_vm1, %v246_v12 }
  0xfb   : > { %465 = shalt.err (!%p462_p3)
}
  0xfc   : > { %s466_s2 = scalar_lea.hbm %s650_s26, 256  ;;  %s470_s5 = scalar_lea.hbm %s694_s1, 512 }
  0xfd   : > { %p467_p5 = scmp.ne.s32.totalorder %s650_s26, %s466_s2  ;;  %p471_p10 = scmp.lt.s32.totalorder %s650_s26, %s694_s1 }
  0xfe   : > { %p472_p4 = scmp.lt.s32.totalorder %s470_s5, %s466_s2 }
  0xff   : > { %p468_p6 = pnand %p467_p5, %p598_p9 }
 0x100   : > { %p473_p13 = por %p472_p4, %p471_p10 }
 0x101   : > { %p469_p7 = pneg %p468_p6 }
 0x103   : > { %p474_p8 = pnand %p473_p13, %p469_p7 }
 0x105   : > { %477 = shalt.err (!%p474_p8)
}
 0x106   : > { %363 = dma.vmem_to_hbm [thread:$0]  (%p598_p9), %s264_s23, 256, %s650_s26, %s249_s27  }
 0x107 PF: > { %s275_s15 = sand.u32 1, %s512_s6   ;;  %p700_p11 = scmp.ne.s32.totalorder %s698_s21, 0 }
 0x108   : > { %p701_p12 = scmp.ge.s32.totalorder %s532_s11, 2  ;;  %s276_s16 = scalar_lea.sflag [#allocation6], %s275_s15 }
 0x10a   : > { %p370_p0 = pnand %p701_p12, %p700_p11 }
 0x10c   : > { %p371_p1 = pneg %p370_p0 }
 0x10e   : > { %507 = dma.done.wait (%p371_p1), %s276_s16, 256  }
 0x10f   : > { %509 = vsyncadd (%p371_p1), %s276_s16, 4294967040  ;;  %s17_s11 = sadd.s32 1, %s532_s11   ;;  %s702_s6 = smov %s516_s7 }
 0x110   : > { %p14_p2 = scmp.ge.s32.totalorder %s17_s11, 4   ;;  %s703_s7 = smov %s520_s8 }
 0x111   : > { %s704_s8 = smov %s603_s20  ;;  %s705_s9 = smov %s528_s10 }
 0x112   : > { %s706_s10 = smov %s708_s14  ;;  %16 = sbr.rel (!%p14_p2) target bundleno = 6 (0x6), region = 77 }
 0x117   :  { %281 = vsyncpa [#allocation5], 1 }
 0x118   :  { %283 = vsyncpa [#allocation5 + $0x1], 1 }
 0x119   :  { %284 = vsyncpa [#allocation6], 1 }
 0x11a   :  { %286 = vsyncpa [#allocation6 + $0x1], 1 }

</bundles_post_ra>
